<compile_context>
chip_gen: v5e
topology: v5e:2x2
jax: 0.10.0
libtpu: 0.0.40
codegen_flags: <defaults>
</compile_context>

<pallas_src>
import jax
import jax.numpy as jnp
from jax.experimental import pallas as pl
from jax.experimental.pallas import tpu as pltpu


def _make_pad_rows_kernel(c_in, c_out, off, dtype):
    """Each output row = zeros(off) | input row (c_in wide) | zeros(rest)."""
    tail = off + c_in

    def kernel(x_ref, o_ref):
        rows = o_ref.shape[0]
        if off:
            o_ref[:, :off] = jnp.zeros((rows, off), dtype)
        o_ref[:, off:tail] = x_ref[...]
        if tail < c_out:
            o_ref[:, tail:] = jnp.zeros((rows, c_out - tail), dtype)

    return kernel


def _vmem_budget():
    """Returns (vmem_limit_bytes, target per-step in+out block bytes)."""
    try:
        info = pltpu.get_tpu_info()
        phys = getattr(info, "vmem_capacity_bytes", None) or (64 << 20)
    except Exception:  # unknown chip: assume the smallest VMEM (v7x, 64 MiB)
        phys = 64 << 20
    # Leave headroom below physical VMEM; cap the scoped limit at 64 MiB.
    vmem_limit = max(32 << 20, min(phys - (16 << 20), 64 << 20))
    target = vmem_limit // 4  # double-buffered in+out stays well under limit
    return int(vmem_limit), int(target)


def _choose_block_rows(n_rows, bytes_per_row, target_bytes):
    """Largest divisor-of-n_rows block (multiple of 8) under the byte budget,
    preferring an even number of grid steps (balance v7x's two TensorCores)."""
    cap = max(1, target_bytes // bytes_per_row)
    if cap >= n_rows:
        return n_rows
    divs = set()
    d = 1
    while d * d <= n_rows:
        if n_rows % d == 0:
            divs.add(d)
            divs.add(n_rows // d)
        d += 1
    best = None
    for r in divs:
        if r <= cap and r % 8 == 0:
            key = ((n_rows // r) % 2 == 0, r)  # (even step count, block size)
            if best is None or key > best:
                best = key
    if best is not None:
        return best[1]
    # TODO(synk): n_rows with no multiple-of-8 divisor under the byte budget
    # (e.g. a large prime plane count) falls back to one full block; a ragged
    # cdiv grid with masked edge writes would avoid the oversized block here.
    return n_rows


def square_pad(x, *, target_block_bytes=None, vmem_limit_bytes=None):
    """Zero-pads a (..., H, W) array to (..., S, S) with S = max(H, W)."""
    *lead, h, w = x.shape
    s = max(h, w)
    if h == w:
        return x  # pad of (0, 0, 0, 0) is the identity

    n_planes = 1
    for d in lead:
        n_planes *= d
    out_full_shape = (*lead, s, s)
    if n_planes == 0:
        return jnp.zeros(out_full_shape, x.dtype)

    p_left = (s - w) // 2
    p_top = (s - h) // 2

    if h < w:
        # Row padding only (s == w): per plane, the interior is one contiguous
        # flat run of h*s elements starting at flat offset p_top*s.
        n_rows, c_in, c_out, off = n_planes, h * w, s * s, p_top * s
    else:
        # Column padding only (s == h): per image row, left/right zero bands.
        n_rows, c_in, c_out, off = n_planes * h, w, s, p_left

    x2d = x.reshape(n_rows, c_in)  # free reshape (row-major contiguous)

    auto_limit, auto_target = _vmem_budget()
    if vmem_limit_bytes is None:
        vmem_limit_bytes = auto_limit
    if target_block_bytes is None:
        target_block_bytes = auto_target

    dsize = jnp.dtype(x.dtype).itemsize
    bytes_per_row = (c_in + c_out) * dsize
    r = _choose_block_rows(n_rows, bytes_per_row, target_block_bytes)
    grid = (n_rows // r,)

    kernel = _make_pad_rows_kernel(c_in, c_out, off, x.dtype)
    cost = pl.CostEstimate(
        flops=0, transcendentals=0, bytes_accessed=n_rows * bytes_per_row)

    out2d = pl.pallas_call(
        kernel,
        out_shape=jax.ShapeDtypeStruct((n_rows, c_out), x.dtype),
        grid_spec=pl.GridSpec(
            grid=grid,
            in_specs=[pl.BlockSpec((r, c_in), lambda i: (i, 0))],
            out_specs=pl.BlockSpec((r, c_out), lambda i: (i, 0)),
        ),
        compiler_params=pltpu.CompilerParams(
            dimension_semantics=("parallel",),
            vmem_limit_bytes=int(vmem_limit_bytes),
        ),
        cost_estimate=cost,
    )(x2d)

    return out2d.reshape(out_full_shape)


def _reference(x):
    h, w = x.shape[-2:]
    s = max(h, w)
    p_left, p_top = (s - w) // 2, (s - h) // 2
    pads = ([(0, 0)] * (x.ndim - 2)
            + [(p_top, s - h - p_top), (p_left, s - w - p_left)])
    return jnp.pad(x, pads)


if __name__ == "__main__":
    key = jax.random.PRNGKey(0)
    k1, k2, k3, k4, k5 = jax.random.split(key, 5)

    # Case 1: wide (H < W): (2, 4, 12, 16) -> (2, 4, 16, 16), top/bottom pad.
    x1 = jax.random.normal(k1, (2, 4, 12, 16), dtype=jnp.float32)
    o1 = jax.block_until_ready(square_pad(x1))
    assert o1.shape == (2, 4, 16, 16), o1.shape
    assert jnp.array_equal(o1, _reference(x1)), "mismatch (case 1)"

    # Case 2: tall (H > W): (3, 24, 16) -> (3, 24, 24), left/right pad.
    x2 = jax.random.normal(k2, (3, 24, 16), dtype=jnp.float32)
    o2 = jax.block_until_ready(square_pad(x2))
    assert o2.shape == (3, 24, 24), o2.shape
    assert jnp.array_equal(o2, _reference(x2)), "mismatch (case 2)"

    # Case 3: multi-step grid (tiny block budget forces several grid steps).
    x3 = jax.random.normal(k3, (2, 3, 40, 32), dtype=jnp.float32)
    o3 = jax.block_until_ready(square_pad(x3, target_block_bytes=8 * 1024))
    assert o3.shape == (2, 3, 40, 40), o3.shape
    assert jnp.array_equal(o3, _reference(x3)), "mismatch (case 3)"

    # Case 4: already square -> identity path (no kernel launch).
    x4 = jax.random.normal(k4, (2, 16, 16), dtype=jnp.float32)
    o4 = jax.block_until_ready(square_pad(x4))
    assert jnp.array_equal(o4, x4), "mismatch (case 4)"

    # Case 5: bf16, zero top pad (p_top == 0, all padding on the bottom).
    x5 = jax.random.normal(k5, (2, 3, 15, 16)).astype(jnp.bfloat16)
    o5 = jax.block_until_ready(square_pad(x5))
    assert o5.shape == (2, 3, 16, 16), o5.shape
    assert jnp.array_equal(o5, _reference(x5)), "mismatch (case 5)"

    print("KERNEL_OK")
</pallas_src>

<mosaic_0001>
module attributes {stable_mosaic.version = 11 : i64} {
  func.func @kernel(%arg0: i32, %arg1: memref<8x192xf32, #tpu.memory_space<vmem>>, %arg2: memref<8x256xf32, #tpu.memory_space<vmem>>) attributes {dimension_semantics = [#tpu.dimension_semantics<parallel>], iteration_bounds = array<i64: 1>, scalar_prefetch = 0 : i64, scratch_operands = 0 : i64, tpu.core_type = #tpu.core_type<tc>, window_params = [{transform_indices = @transform_0, window_bounds = array<i64: 8, 192>}, {transform_indices = @transform_1, window_bounds = array<i64: 8, 256>}]} {
    %cst = arith.constant 0.000000e+00 : f32
    %0 = vector.broadcast %cst : f32 to vector<8x32xf32>
    %c0 = arith.constant 0 : index
    %c0_0 = arith.constant 0 : index
    %1 = vector.load %arg2[%c0, %c0_0] : memref<8x256xf32, #tpu.memory_space<vmem>>, vector<8x32xf32>
    tpu.vector_store %arg2[%c0, %c0_0], %0 {strides = array<i32>} : memref<8x256xf32, #tpu.memory_space<vmem>>, vector<8x32xf32>,
    %c0_1 = arith.constant 0 : index
    %c0_2 = arith.constant 0 : index
    %2 = vector.load %arg1[%c0_1, %c0_2] : memref<8x192xf32, #tpu.memory_space<vmem>>, vector<8x192xf32>
    %c0_3 = arith.constant 0 : index
    %c32 = arith.constant 32 : index
    %3 = vector.load %arg2[%c0_3, %c32] : memref<8x256xf32, #tpu.memory_space<vmem>>, vector<8x192xf32>
    tpu.vector_store %arg2[%c0_3, %c32], %2 {strides = array<i32>} : memref<8x256xf32, #tpu.memory_space<vmem>>, vector<8x192xf32>,
    %cst_4 = arith.constant 0.000000e+00 : f32
    %4 = vector.broadcast %cst_4 : f32 to vector<8x32xf32>
    %c0_5 = arith.constant 0 : index
    %c224 = arith.constant 224 : index
    %5 = vector.load %arg2[%c0_5, %c224] : memref<8x256xf32, #tpu.memory_space<vmem>>, vector<8x32xf32>
    tpu.vector_store %arg2[%c0_5, %c224], %4 {strides = array<i32>} : memref<8x256xf32, #tpu.memory_space<vmem>>, vector<8x32xf32>,
    return
  }
  func.func @transform_0(%arg0: i32) -> (i32, i32) {
    %c0_i32 = arith.constant 0 : i32
    %c0_i32_0 = arith.constant 0 : i32
    return %arg0, %c0_i32 : i32, i32
  }
  func.func @transform_1(%arg0: i32) -> (i32, i32) {
    %c0_i32 = arith.constant 0 : i32
    %c0_i32_0 = arith.constant 0 : i32
    return %arg0, %c0_i32 : i32, i32
  }
}

</mosaic_0001>

<bundles_post_ra>
// kernel: tpu_custom_call.1
= control target key start
LH: loop header
LB: loop body
LE: loop exit
PB: predicated region body
PF: predicated region fallthrough
CT: control target
= control target key end

     0   :  { %6 = vsyncpa [#allocation3], 0  ;;  %s137_s0 = inlined_call_operand.hbm [shape: f32[8,192], index: 0, kind: input, shape index: {}]   ;;  %s138_s1 = inlined_call_operand.hbm [shape: f32[8,256], index: 1, kind: output, shape index: {}]  }
   0x1   :  { %7 = vsyncpa [#allocation4], 0  ;;  %s13_s8 = sshll.u32 %s137_s0, 4  ;;  %s115_s9 = smov [#allocation2]   ;;  %s14_s8 = int_to_ptr.hbm [resolvable:$true] %s13_s8 }
   0x2   :  { %s15_s10 = sshll.u32 %s115_s9, 4  ;;  %s16_s10 = int_to_ptr.vmem [resolvable:$true] %s15_s10 }
   0x3   :  { %18 = dma.hbm_to_vmem [thread:$0]  %s14_s8, 256, %s16_s10, [#allocation3]  }
   0x4   :  { %111 = dma.done.wait [#allocation3], 256  }
   0x5   :  { %112 = vsyncadd [#allocation3], 4294967040  ;;  %vm23_vm0 = vcmask 261120   ;;  %v116_v0 = vmov 0.0   ;;  %v25_v1 = vld [vmem:[#allocation2] sm:$0xff]  ;;  %s117_s11 = smov 32  }
   0x6   :  { %24 = vst.msk [vmem:[#allocation5] sm:$0xff] %vm23_vm0, %v116_v0  ;;  %29 = vrot.lane.b32.xlu0 %v25_v1, %s117_s11  ;;  %v26_v2 = vld [vmem:[#allocation2 + $0x8] sm:$0xff]  ;;  %vm36_vm1 = vcmask 1047808   ;;  %s118_s0 = smov [#allocation5]   ;;  %s49_s15 = sshll.u32 %s138_s1, 4  ;;  %vm38_vm2 = vcmask 785408   ;;  %s50_s15 = int_to_ptr.hbm [resolvable:$true] %s49_s15 }
   0x7   :  { %s47_s12 = sshll.u32 %s118_s0, 4  ;;  %vm40_vm3 = vcmask 1048320   ;;  %s48_s12 = int_to_ptr.vmem [resolvable:$true] %s47_s12 }
   0xe   :  { %31 = vrot.lane.b32.xlu0 %v26_v2, %s117_s11 }
  0x78   :  { %v30_v3 = vpop.permute.xlu0 %29 }
  0x79   :  { %37 = vst.msk [vmem:[#allocation5] sm:$0xff] %vm36_vm1, %v30_v3 }
  0x80   :  { %v32_v4 = vpop.permute.xlu0 %31 }
  0x81   :  { %v33_v5 = vsel %vm23_vm0, %v30_v3, %v32_v4 }
  0x82   :  { %39 = vst.msk [vmem:[#allocation5 + $0x8] sm:$0xff] %vm38_vm2, %v33_v5 }
  0x83   :  { %41 = vst.msk [vmem:[#allocation5 + $0x8] sm:$0xff] %vm40_vm3, %v116_v0 }
  0x84   :  { %52 = dma.vmem_to_hbm [thread:$0]  %s48_s12, 256, %s50_s15, [#allocation4]  }
  0x85   :  { %113 = dma.done.wait [#allocation4], 256  }
  0x86   :  { %114 = vsyncadd [#allocation4], 4294967040 }
  0x87   :  { %57 = vsyncpa [#allocation3], 1 }
  0x88   :  { %58 = vsyncpa [#allocation4], 1 }

</bundles_post_ra>
